<compile_context>
chip_gen: v6e
topology: v6e:2x2x1
jax: 0.10.0
libtpu: 0.0.40
codegen_flags: <defaults>
</compile_context>

<pallas_src>
import jax
import jax.numpy as jnp
from jax.experimental import pallas as pl
from jax.experimental.pallas import tpu as pltpu

BN_EPS = 1e-5


def upblock_kernel(xd_ref, skip_ref, cond_ref,
                   w_up_ref, b_up_ref,
                   w_skip_ref, b_skip_ref,
                   w1_ref, b1_ref,
                   w2_ref, b2_ref,
                   wc_ref, bc_ref,
                   o_ref,
                   g_pad, y_pad):
    f32 = jnp.float32
    dot = lambda a, b: jnp.dot(a, b, preferred_element_type=f32)

    Cout, L2 = o_ref.shape[1], o_ref.shape[2]

    # ---- ConvTranspose1d(Cin -> Cout, k=4, s=2, p=1) ----
    # x was zero-dilated (stride 2) and padded (2 left / 1 right) in the
    # wrapper, so the transposed conv is a plain 4-tap conv; fold the 4 taps
    # into one (Cout, 4*Cin) x (4*Cin, L2) MXU matmul.
    xd = xd_ref[0]                                            # (Cin, L2 + 3)
    xs = jnp.concatenate([xd[:, d:d + L2] for d in range(4)], axis=0)
    up = dot(w_up_ref[...], xs) + b_up_ref[...]               # (Cout, L2)

    # ---- skip 1x1 conv ----
    sp = dot(w_skip_ref[...], skip_ref[0]) + b_skip_ref[...]  # (Cout, L2)

    # Stage [up; sp] in a padded scratch so the k=3 taps become offset windows.
    # Only the two boundary columns are written (no full-tile zero fill); the
    # interior is fully rewritten every step.
    zc2 = jnp.zeros((2 * Cout, 1), f32)
    g_pad[:, pl.ds(0, 1)] = zc2
    g_pad[:, pl.ds(L2 + 1, 1)] = zc2
    g_pad[pl.ds(0, Cout), pl.ds(1, L2)] = up
    g_pad[pl.ds(Cout, Cout), pl.ds(1, L2)] = sp

    # ---- Conv1d(2*Cout -> Cout, k=3, p=1) + BatchNorm (folded) + SiLU ----
    # single (Cout, 6*Cout) x (6*Cout, L2) matmul over the 3 shifted windows.
    h1 = jnp.concatenate([g_pad[:, pl.ds(t, L2)] for t in range(3)], axis=0)
    y1 = dot(w1_ref[...], h1) + b1_ref[...]
    y1 = y1 * jax.nn.sigmoid(y1)
    # TODO(synk): nn.Dropout is identity here (eval mode); train-mode RNG mask not implemented.

    zc1 = jnp.zeros((Cout, 1), f32)
    y_pad[:, pl.ds(0, 1)] = zc1
    y_pad[:, pl.ds(L2 + 1, 1)] = zc1
    y_pad[:, pl.ds(1, L2)] = y1

    # ---- Conv1d(Cout -> Cout, k=3, p=1) + BatchNorm (folded) + SiLU ----
    h2 = jnp.concatenate([y_pad[:, pl.ds(t, L2)] for t in range(3)], axis=0)
    y2 = dot(w2_ref[...], h2) + b2_ref[...]
    y2 = y2 * jax.nn.sigmoid(y2)

    # ---- condition projection (Linear) broadcast along length ----
    cp = jnp.sum(wc_ref[...] * cond_ref[0], axis=1, keepdims=True) + bc_ref[...]
    o_ref[0] = (y2 + cp).astype(o_ref.dtype)


def linear_interp_ncl(x, out_len):
    """F.interpolate(mode='linear', align_corners=False) on (N, C, L). Glue."""
    _, _, lin = x.shape
    if lin == out_len:
        return x
    scale = lin / out_len
    pos = (jnp.arange(out_len, dtype=jnp.float32) + 0.5) * scale - 0.5
    pos = jnp.clip(pos, 0.0, lin - 1)
    lo = jnp.floor(pos).astype(jnp.int32)
    hi = jnp.minimum(lo + 1, lin - 1)
    w = pos - lo.astype(jnp.float32)
    return x[:, :, lo] * (1.0 - w) + x[:, :, hi] * w


def upblock_forward(x, skip, cond, p):
    N, Cin, L = x.shape
    Cout = p["b_up"].shape[0]
    Cskip = p["w_skip"].shape[1]
    Dc = p["w_cond"].shape[1]
    L2 = 2 * L

    # ---- glue: skip interpolation (only when lengths mismatch) ----
    skip = linear_interp_ncl(skip, L2)

    # ---- glue: zero-dilate (stride 2) and pad x so ConvTranspose1d becomes a
    #      plain 4-tap convolution inside the kernel ----
    xd = jnp.zeros((N, Cin, L2 + 3), jnp.float32)
    xd = xd.at[:, :, 2:2 * L + 2:2].set(x.astype(jnp.float32))

    # ---- glue: fold conv taps / BatchNorm into single matrices ----
    w_up = p["w_up"]                                             # (Cin, Cout, 4)
    w_up_fold = jnp.concatenate(
        [w_up[:, :, 3 - d].T for d in range(4)], axis=1)         # (Cout, 4*Cin)
    b_up = p["b_up"].reshape(Cout, 1)

    w_skip = p["w_skip"][:, :, 0]                                # (Cout, Cskip)
    b_skip = p["b_skip"].reshape(Cout, 1)

    s1 = p["bn1_gamma"] / jnp.sqrt(p["bn1_var"] + BN_EPS)
    w1_fold = jnp.concatenate([p["w1"][:, :, t] for t in range(3)], axis=1)
    w1_fold = w1_fold * s1[:, None]                              # (Cout, 6*Cout)
    b1_eff = (s1 * (p["b1"] - p["bn1_mean"]) + p["bn1_beta"]).reshape(Cout, 1)

    s2 = p["bn2_gamma"] / jnp.sqrt(p["bn2_var"] + BN_EPS)
    w2_fold = jnp.concatenate([p["w2"][:, :, t] for t in range(3)], axis=1)
    w2_fold = w2_fold * s2[:, None]                              # (Cout, 3*Cout)
    b2_eff = (s2 * (p["b2"] - p["bn2_mean"]) + p["bn2_beta"]).reshape(Cout, 1)

    w_cond = p["w_cond"]                                         # (Cout, Dc)
    b_cond = p["b_cond"].reshape(Cout, 1)

    cond3 = cond[:, None, :]                                     # (N, 1, Dc)

    inv2 = lambda shape: pl.BlockSpec(shape, lambda n: (0, 0))   # grid-invariant

    grid_spec = pltpu.PrefetchScalarGridSpec(
        num_scalar_prefetch=0,
        grid=(N,),
        in_specs=[
            pl.BlockSpec((1, Cin, L2 + 3), lambda n: (n, 0, 0)),
            pl.BlockSpec((1, Cskip, L2), lambda n: (n, 0, 0)),
            pl.BlockSpec((1, 1, Dc), lambda n: (n, 0, 0)),
            inv2((Cout, 4 * Cin)),
            inv2((Cout, 1)),
            inv2((Cout, Cskip)),
            inv2((Cout, 1)),
            inv2((Cout, 6 * Cout)),
            inv2((Cout, 1)),
            inv2((Cout, 3 * Cout)),
            inv2((Cout, 1)),
            inv2((Cout, Dc)),
            inv2((Cout, 1)),
        ],
        out_specs=pl.BlockSpec((1, Cout, L2), lambda n: (n, 0, 0)),
        scratch_shapes=[
            pltpu.VMEM((2 * Cout, L2 + 2), jnp.float32),   # padded [up; skip_proj]
            pltpu.VMEM((Cout, L2 + 2), jnp.float32),       # padded y1
        ],
    )

    return pl.pallas_call(
        upblock_kernel,
        out_shape=jax.ShapeDtypeStruct((N, Cout, L2), jnp.float32),
        grid_spec=grid_spec,
        compiler_params=pltpu.CompilerParams(
            dimension_semantics=("parallel",),
            vmem_limit_bytes=48 * 1024 * 1024,
        ),
    )(xd, skip, cond3, w_up_fold, b_up, w_skip, b_skip,
      w1_fold, b1_eff, w2_fold, b2_eff, w_cond, b_cond)


def ref_forward(x, skip, cond, p):
    """Pure-JAX reference (XLA convs) for correctness checking."""
    dn = ('NCH', 'OIH', 'NCH')
    # ConvTranspose1d(k=4,s=2,p=1) == dilated forward conv with flipped kernel
    wk = jnp.flip(p["w_up"], axis=2).transpose(1, 0, 2)      # (Cout, Cin, 4)
    up = jax.lax.conv_general_dilated(x, wk, window_strides=(1,),
                                      padding=[(2, 2)], lhs_dilation=(2,),
                                      dimension_numbers=dn)
    up = up + p["b_up"][None, :, None]
    L2 = up.shape[2]
    sk = linear_interp_ncl(skip, L2)
    sp = jax.lax.conv_general_dilated(sk, p["w_skip"], (1,), [(0, 0)],
                                      dimension_numbers=dn) + p["b_skip"][None, :, None]
    h = jnp.concatenate([up, sp], axis=1)
    y1 = jax.lax.conv_general_dilated(h, p["w1"], (1,), [(1, 1)],
                                      dimension_numbers=dn) + p["b1"][None, :, None]
    s1 = p["bn1_gamma"] / jnp.sqrt(p["bn1_var"] + BN_EPS)
    y1 = (y1 - p["bn1_mean"][None, :, None]) * s1[None, :, None] + p["bn1_beta"][None, :, None]
    y1 = y1 * jax.nn.sigmoid(y1)
    y2 = jax.lax.conv_general_dilated(y1, p["w2"], (1,), [(1, 1)],
                                      dimension_numbers=dn) + p["b2"][None, :, None]
    s2 = p["bn2_gamma"] / jnp.sqrt(p["bn2_var"] + BN_EPS)
    y2 = (y2 - p["bn2_mean"][None, :, None]) * s2[None, :, None] + p["bn2_beta"][None, :, None]
    y2 = y2 * jax.nn.sigmoid(y2)
    cp = cond @ p["w_cond"].T + p["b_cond"]
    return y2 + cp[:, :, None]


if __name__ == "__main__":
    N, Cin, Cout, Cskip, Dc, L = 2, 8, 8, 6, 16, 16

    key = jax.random.PRNGKey(0)
    keys = jax.random.split(key, 16)
    nrm = lambda k, s: 0.1 * jax.random.normal(k, s, dtype=jnp.float32)

    params = dict(
        w_up=nrm(keys[0], (Cin, Cout, 4)), b_up=nrm(keys[1], (Cout,)),
        w_skip=nrm(keys[2], (Cout, Cskip, 1)), b_skip=nrm(keys[3], (Cout,)),
        w1=nrm(keys[4], (Cout, 2 * Cout, 3)), b1=nrm(keys[5], (Cout,)),
        bn1_gamma=jnp.ones((Cout,), jnp.float32), bn1_beta=jnp.zeros((Cout,), jnp.float32),
        bn1_mean=jnp.zeros((Cout,), jnp.float32), bn1_var=jnp.ones((Cout,), jnp.float32),
        w2=nrm(keys[6], (Cout, Cout, 3)), b2=nrm(keys[7], (Cout,)),
        bn2_gamma=jnp.ones((Cout,), jnp.float32), bn2_beta=jnp.zeros((Cout,), jnp.float32),
        bn2_mean=jnp.zeros((Cout,), jnp.float32), bn2_var=jnp.ones((Cout,), jnp.float32),
        w_cond=nrm(keys[8], (Cout, Dc)), b_cond=nrm(keys[9], (Cout,)),
    )

    x = jax.random.normal(keys[10], (N, Cin, L), dtype=jnp.float32)
    skip = jax.random.normal(keys[11], (N, Cskip, 2 * L), dtype=jnp.float32)
    cond = jax.random.normal(keys[12], (N, Dc), dtype=jnp.float32)

    out = upblock_forward(x, skip, cond, params)
    out = jax.block_until_ready(out)

    ref = ref_forward(x, skip, cond, params)
    err = float(jnp.max(jnp.abs(out - ref)))
    assert out.shape == (N, Cout, 2 * L), out.shape
    assert err < 1e-2, f"max abs err {err}"
    print("KERNEL_OK")
</pallas_src>

<mosaic_0001>
module attributes {stable_mosaic.version = 11 : i64} {
  func.func @upblock_kernel(%arg0: i32, %arg1: memref<1x8x35xf32, #tpu.memory_space<vmem>>, %arg2: memref<1x6x32xf32, #tpu.memory_space<vmem>>, %arg3: memref<1x1x16xf32, #tpu.memory_space<vmem>>, %arg4: memref<8x32xf32, #tpu.memory_space<vmem>>, %arg5: memref<8x1xf32, #tpu.memory_space<vmem>>, %arg6: memref<8x6xf32, #tpu.memory_space<vmem>>, %arg7: memref<8x1xf32, #tpu.memory_space<vmem>>, %arg8: memref<8x48xf32, #tpu.memory_space<vmem>>, %arg9: memref<8x1xf32, #tpu.memory_space<vmem>>, %arg10: memref<8x24xf32, #tpu.memory_space<vmem>>, %arg11: memref<8x1xf32, #tpu.memory_space<vmem>>, %arg12: memref<8x16xf32, #tpu.memory_space<vmem>>, %arg13: memref<8x1xf32, #tpu.memory_space<vmem>>, %arg14: memref<1x8x32xf32, #tpu.memory_space<vmem>>, %arg15: memref<16x34xf32, #tpu.memory_space<vmem>>, %arg16: memref<8x34xf32, #tpu.memory_space<vmem>>) attributes {dimension_semantics = [#tpu.dimension_semantics<parallel>], iteration_bounds = array<i64: 2>, scalar_prefetch = 0 : i64, scratch_operands = 2 : i64, tpu.core_type = #tpu.core_type<tc>, window_params = [{transform_indices = @transform_0, window_bounds = array<i64: 1, 8, 35>}, {transform_indices = @transform_1, window_bounds = array<i64: 1, 6, 32>}, {transform_indices = @transform_2, window_bounds = array<i64: 1, 1, 16>}, {pipeline_mode = #tpu.pipeline_mode<synchronous>, transform_indices = @transform_3, window_bounds = array<i64: 8, 32>}, {pipeline_mode = #tpu.pipeline_mode<synchronous>, transform_indices = @transform_4, window_bounds = array<i64: 8, 1>}, {pipeline_mode = #tpu.pipeline_mode<synchronous>, transform_indices = @transform_5, window_bounds = array<i64: 8, 6>}, {pipeline_mode = #tpu.pipeline_mode<synchronous>, transform_indices = @transform_6, window_bounds = array<i64: 8, 1>}, {pipeline_mode = #tpu.pipeline_mode<synchronous>, transform_indices = @transform_7, window_bounds = array<i64: 8, 48>}, {pipeline_mode = #tpu.pipeline_mode<synchronous>, transform_indices = @transform_8, window_bounds = array<i64: 8, 1>}, {pipeline_mode = #tpu.pipeline_mode<synchronous>, transform_indices = @transform_9, window_bounds = array<i64: 8, 24>}, {pipeline_mode = #tpu.pipeline_mode<synchronous>, transform_indices = @transform_10, window_bounds = array<i64: 8, 1>}, {pipeline_mode = #tpu.pipeline_mode<synchronous>, transform_indices = @transform_11, window_bounds = array<i64: 8, 16>}, {pipeline_mode = #tpu.pipeline_mode<synchronous>, transform_indices = @transform_12, window_bounds = array<i64: 8, 1>}, {transform_indices = @transform_13, window_bounds = array<i64: 1, 8, 32>}]} {
    %c0 = arith.constant 0 : index
    %c0_0 = arith.constant 0 : index
    %c0_1 = arith.constant 0 : index
    %0 = vector.load %arg1[%c0, %c0_0, %c0_1] : memref<1x8x35xf32, #tpu.memory_space<vmem>>, vector<1x8x35xf32>
    %1 = vector.shape_cast %0 : vector<1x8x35xf32> to vector<8x35xf32>
    %2 = vector.extract_strided_slice %1 {offsets = [0, 0], sizes = [8, 32], strides = [1, 1]} : vector<8x35xf32> to vector<8x32xf32>
    %3 = vector.extract_strided_slice %1 {offsets = [0, 1], sizes = [8, 32], strides = [1, 1]} : vector<8x35xf32> to vector<8x32xf32>
    %4 = vector.extract_strided_slice %1 {offsets = [0, 2], sizes = [8, 32], strides = [1, 1]} : vector<8x35xf32> to vector<8x32xf32>
    %5 = vector.extract_strided_slice %1 {offsets = [0, 3], sizes = [8, 32], strides = [1, 1]} : vector<8x35xf32> to vector<8x32xf32>
    %6 = tpu.concatenate %2, %3, %4, %5 in 0 : vector<8x32xf32>, vector<8x32xf32>, vector<8x32xf32>, vector<8x32xf32> -> vector<32x32xf32>
    %c0_2 = arith.constant 0 : index
    %c0_3 = arith.constant 0 : index
    %7 = vector.load %arg4[%c0_2, %c0_3] : memref<8x32xf32, #tpu.memory_space<vmem>>, vector<8x32xf32>
    %cst = arith.constant dense<0.000000e+00> : vector<8x32xf32>
    %8 = tpu.matmul %7, %6, %cst {dimension_numbers = #tpu.dot_dimension_numbers<[1], [0], [0], [1], [0, 0, 1, 1], [], []>} : vector<8x32xf32>, vector<32x32xf32>, vector<8x32xf32> -> vector<8x32xf32>
    %c0_4 = arith.constant 0 : index
    %c0_5 = arith.constant 0 : index
    %9 = vector.load %arg5[%c0_4, %c0_5] : memref<8x1xf32, #tpu.memory_space<vmem>>, vector<8x1xf32>
    %10 = vector.broadcast %9 : vector<8x1xf32> to vector<8x32xf32>
    %11 = arith.addf %8, %10 : vector<8x32xf32>
    %c0_6 = arith.constant 0 : index
    %c0_7 = arith.constant 0 : index
    %12 = vector.load %arg6[%c0_6, %c0_7] : memref<8x6xf32, #tpu.memory_space<vmem>>, vector<8x6xf32>
    %c0_8 = arith.constant 0 : index
    %c0_9 = arith.constant 0 : index
    %c0_10 = arith.constant 0 : index
    %13 = vector.load %arg2[%c0_8, %c0_9, %c0_10] : memref<1x6x32xf32, #tpu.memory_space<vmem>>, vector<1x6x32xf32>
    %14 = vector.shape_cast %13 : vector<1x6x32xf32> to vector<6x32xf32>
    %cst_11 = arith.constant dense<0.000000e+00> : vector<8x32xf32>
    %15 = tpu.matmul %12, %14, %cst_11 {dimension_numbers = #tpu.dot_dimension_numbers<[1], [0], [0], [1], [0, 0, 1, 1], [], []>} : vector<8x6xf32>, vector<6x32xf32>, vector<8x32xf32> -> vector<8x32xf32>
    %c0_12 = arith.constant 0 : index
    %c0_13 = arith.constant 0 : index
    %16 = vector.load %arg7[%c0_12, %c0_13] : memref<8x1xf32, #tpu.memory_space<vmem>>, vector<8x1xf32>
    %17 = vector.broadcast %16 : vector<8x1xf32> to vector<8x32xf32>
    %18 = arith.addf %15, %17 : vector<8x32xf32>
    %cst_14 = arith.constant 0.000000e+00 : f32
    %19 = vector.broadcast %cst_14 : f32 to vector<16x1xf32>
    %c0_15 = arith.constant 0 : index
    %c0_16 = arith.constant 0 : index
    %20 = vector.load %arg15[%c0_15, %c0_16] : memref<16x34xf32, #tpu.memory_space<vmem>>, vector<16x1xf32>
    tpu.vector_store %arg15[%c0_15, %c0_16], %19 {strides = array<i32>} : memref<16x34xf32, #tpu.memory_space<vmem>>, vector<16x1xf32>,
    %c0_17 = arith.constant 0 : index
    %c33 = arith.constant 33 : index
    %21 = vector.load %arg15[%c0_17, %c33] : memref<16x34xf32, #tpu.memory_space<vmem>>, vector<16x1xf32>
    tpu.vector_store %arg15[%c0_17, %c33], %19 {strides = array<i32>} : memref<16x34xf32, #tpu.memory_space<vmem>>, vector<16x1xf32>,
    %c0_18 = arith.constant 0 : index
    %c1 = arith.constant 1 : index
    %22 = vector.load %arg15[%c0_18, %c1] : memref<16x34xf32, #tpu.memory_space<vmem>>, vector<8x32xf32>
    tpu.vector_store %arg15[%c0_18, %c1], %11 {strides = array<i32>} : memref<16x34xf32, #tpu.memory_space<vmem>>, vector<8x32xf32>,
    %c8 = arith.constant 8 : index
    %c1_19 = arith.constant 1 : index
    %23 = vector.load %arg15[%c8, %c1_19] : memref<16x34xf32, #tpu.memory_space<vmem>>, vector<8x32xf32>
    tpu.vector_store %arg15[%c8, %c1_19], %18 {strides = array<i32>} : memref<16x34xf32, #tpu.memory_space<vmem>>, vector<8x32xf32>,
    %c0_20 = arith.constant 0 : index
    %c0_21 = arith.constant 0 : index
    %24 = vector.load %arg15[%c0_20, %c0_21] : memref<16x34xf32, #tpu.memory_space<vmem>>, vector<16x32xf32>
    %c0_22 = arith.constant 0 : index
    %c1_23 = arith.constant 1 : index
    %25 = vector.load %arg15[%c0_22, %c1_23] : memref<16x34xf32, #tpu.memory_space<vmem>>, vector<16x32xf32>
    %c0_24 = arith.constant 0 : index
    %c2 = arith.constant 2 : index
    %26 = vector.load %arg15[%c0_24, %c2] : memref<16x34xf32, #tpu.memory_space<vmem>>, vector<16x32xf32>
    %27 = tpu.concatenate %24, %25, %26 in 0 : vector<16x32xf32>, vector<16x32xf32>, vector<16x32xf32> -> vector<48x32xf32>
    %c0_25 = arith.constant 0 : index
    %c0_26 = arith.constant 0 : index
    %28 = vector.load %arg8[%c0_25, %c0_26] : memref<8x48xf32, #tpu.memory_space<vmem>>, vector<8x48xf32>
    %cst_27 = arith.constant dense<0.000000e+00> : vector<8x32xf32>
    %29 = tpu.matmul %28, %27, %cst_27 {dimension_numbers = #tpu.dot_dimension_numbers<[1], [0], [0], [1], [0, 0, 1, 1], [], []>} : vector<8x48xf32>, vector<48x32xf32>, vector<8x32xf32> -> vector<8x32xf32>
    %c0_28 = arith.constant 0 : index
    %c0_29 = arith.constant 0 : index
    %30 = vector.load %arg9[%c0_28, %c0_29] : memref<8x1xf32, #tpu.memory_space<vmem>>, vector<8x1xf32>
    %31 = vector.broadcast %30 : vector<8x1xf32> to vector<8x32xf32>
    %32 = arith.addf %29, %31 : vector<8x32xf32>
    %33 = arith.negf %32 : vector<8x32xf32>
    %34 = math.exp %33 : vector<8x32xf32>
    %cst_30 = arith.constant 1.000000e+00 : f32
    %35 = vector.broadcast %cst_30 : f32 to vector<8x32xf32>
    %36 = arith.addf %35, %34 : vector<8x32xf32>
    %37 = arith.divf %35, %36 : vector<8x32xf32>
    %38 = arith.mulf %32, %37 : vector<8x32xf32>
    %cst_31 = arith.constant 0.000000e+00 : f32
    %39 = vector.broadcast %cst_31 : f32 to vector<8x1xf32>
    %c0_32 = arith.constant 0 : index
    %c0_33 = arith.constant 0 : index
    %40 = vector.load %arg16[%c0_32, %c0_33] : memref<8x34xf32, #tpu.memory_space<vmem>>, vector<8x1xf32>
    tpu.vector_store %arg16[%c0_32, %c0_33], %39 {strides = array<i32>} : memref<8x34xf32, #tpu.memory_space<vmem>>, vector<8x1xf32>,
    %c0_34 = arith.constant 0 : index
    %c33_35 = arith.constant 33 : index
    %41 = vector.load %arg16[%c0_34, %c33_35] : memref<8x34xf32, #tpu.memory_space<vmem>>, vector<8x1xf32>
    tpu.vector_store %arg16[%c0_34, %c33_35], %39 {strides = array<i32>} : memref<8x34xf32, #tpu.memory_space<vmem>>, vector<8x1xf32>,
    %c0_36 = arith.constant 0 : index
    %c1_37 = arith.constant 1 : index
    %42 = vector.load %arg16[%c0_36, %c1_37] : memref<8x34xf32, #tpu.memory_space<vmem>>, vector<8x32xf32>
    tpu.vector_store %arg16[%c0_36, %c1_37], %38 {strides = array<i32>} : memref<8x34xf32, #tpu.memory_space<vmem>>, vector<8x32xf32>,
    %c0_38 = arith.constant 0 : index
    %c0_39 = arith.constant 0 : index
    %43 = vector.load %arg16[%c0_38, %c0_39] : memref<8x34xf32, #tpu.memory_space<vmem>>, vector<8x32xf32>
    %c0_40 = arith.constant 0 : index
    %c1_41 = arith.constant 1 : index
    %44 = vector.load %arg16[%c0_40, %c1_41] : memref<8x34xf32, #tpu.memory_space<vmem>>, vector<8x32xf32>
    %c0_42 = arith.constant 0 : index
    %c2_43 = arith.constant 2 : index
    %45 = vector.load %arg16[%c0_42, %c2_43] : memref<8x34xf32, #tpu.memory_space<vmem>>, vector<8x32xf32>
    %46 = tpu.concatenate %43, %44, %45 in 0 : vector<8x32xf32>, vector<8x32xf32>, vector<8x32xf32> -> vector<24x32xf32>
    %c0_44 = arith.constant 0 : index
    %c0_45 = arith.constant 0 : index
    %47 = vector.load %arg10[%c0_44, %c0_45] : memref<8x24xf32, #tpu.memory_space<vmem>>, vector<8x24xf32>
    %cst_46 = arith.constant dense<0.000000e+00> : vector<8x32xf32>
    %48 = tpu.matmul %47, %46, %cst_46 {dimension_numbers = #tpu.dot_dimension_numbers<[1], [0], [0], [1], [0, 0, 1, 1], [], []>} : vector<8x24xf32>, vector<24x32xf32>, vector<8x32xf32> -> vector<8x32xf32>
    %c0_47 = arith.constant 0 : index
    %c0_48 = arith.constant 0 : index
    %49 = vector.load %arg11[%c0_47, %c0_48] : memref<8x1xf32, #tpu.memory_space<vmem>>, vector<8x1xf32>
    %50 = vector.broadcast %49 : vector<8x1xf32> to vector<8x32xf32>
    %51 = arith.addf %48, %50 : vector<8x32xf32>
    %52 = arith.negf %51 : vector<8x32xf32>
    %53 = math.exp %52 : vector<8x32xf32>
    %cst_49 = arith.constant 1.000000e+00 : f32
    %54 = vector.broadcast %cst_49 : f32 to vector<8x32xf32>
    %55 = arith.addf %54, %53 : vector<8x32xf32>
    %56 = arith.divf %54, %55 : vector<8x32xf32>
    %57 = arith.mulf %51, %56 : vector<8x32xf32>
    %c0_50 = arith.constant 0 : index
    %c0_51 = arith.constant 0 : index
    %58 = vector.load %arg12[%c0_50, %c0_51] : memref<8x16xf32, #tpu.memory_space<vmem>>, vector<8x16xf32>
    %c0_52 = arith.constant 0 : index
    %c0_53 = arith.constant 0 : index
    %c0_54 = arith.constant 0 : index
    %59 = vector.load %arg3[%c0_52, %c0_53, %c0_54] : memref<1x1x16xf32, #tpu.memory_space<vmem>>, vector<1x1x16xf32>
    %60 = vector.shape_cast %59 : vector<1x1x16xf32> to vector<1x16xf32>
    %61 = vector.broadcast %60 : vector<1x16xf32> to vector<8x16xf32>
    %62 = arith.mulf %58, %61 : vector<8x16xf32>
    %cst_55 = arith.constant dense<0.000000e+00> : vector<8xf32>
    %63 = vector.multi_reduction <add>, %62, %cst_55 [1] : vector<8x16xf32> to vector<8xf32>
    %64 = vector.shape_cast %63 : vector<8xf32> to vector<8x1xf32>
    %c0_56 = arith.constant 0 : index
    %c0_57 = arith.constant 0 : index
    %65 = vector.load %arg13[%c0_56, %c0_57] : memref<8x1xf32, #tpu.memory_space<vmem>>, vector<8x1xf32>
    %66 = arith.addf %64, %65 : vector<8x1xf32>
    %67 = vector.broadcast %66 : vector<8x1xf32> to vector<8x32xf32>
    %68 = arith.addf %57, %67 : vector<8x32xf32>
    %c0_58 = arith.constant 0 : index
    %c0_59 = arith.constant 0 : index
    %c0_60 = arith.constant 0 : index
    %69 = vector.load %arg14[%c0_58, %c0_59, %c0_60] : memref<1x8x32xf32, #tpu.memory_space<vmem>>, vector<1x8x32xf32>
    %70 = vector.shape_cast %69 : vector<1x8x32xf32> to vector<8x32xf32>
    %71 = vector.shape_cast %68 : vector<8x32xf32> to vector<1x8x32xf32>
    tpu.vector_store %arg14[%c0_58, %c0_59, %c0_60], %71 {strides = array<i32>} : memref<1x8x32xf32, #tpu.memory_space<vmem>>, vector<1x8x32xf32>,
    return
  }
  func.func @transform_0(%arg0: i32) -> (i32, i32, i32) {
    %c0_i32 = arith.constant 0 : i32
    %c0_i32_0 = arith.constant 0 : i32
    %c0_i32_1 = arith.constant 0 : i32
    return %arg0, %c0_i32, %c0_i32_0 : i32, i32, i32
  }
  func.func @transform_1(%arg0: i32) -> (i32, i32, i32) {
    %c0_i32 = arith.constant 0 : i32
    %c0_i32_0 = arith.constant 0 : i32
    %c0_i32_1 = arith.constant 0 : i32
    return %arg0, %c0_i32, %c0_i32_0 : i32, i32, i32
  }
  func.func @transform_2(%arg0: i32) -> (i32, i32, i32) {
    %c0_i32 = arith.constant 0 : i32
    %c0_i32_0 = arith.constant 0 : i32
    %c0_i32_1 = arith.constant 0 : i32
    return %arg0, %c0_i32, %c0_i32_0 : i32, i32, i32
  }
  func.func @transform_3(%arg0: i32) -> (i32, i32) {
    %c0_i32 = arith.constant 0 : i32
    %c0_i32_0 = arith.constant 0 : i32
    %c0_i32_1 = arith.constant 0 : i32
    return %c0_i32, %c0_i32_0 : i32, i32
  }
  func.func @transform_4(%arg0: i32) -> (i32, i32) {
    %c0_i32 = arith.constant 0 : i32
    %c0_i32_0 = arith.constant 0 : i32
    %c0_i32_1 = arith.constant 0 : i32
    return %c0_i32, %c0_i32_0 : i32, i32
  }
  func.func @transform_5(%arg0: i32) -> (i32, i32) {
    %c0_i32 = arith.constant 0 : i32
    %c0_i32_0 = arith.constant 0 : i32
    %c0_i32_1 = arith.constant 0 : i32
    return %c0_i32, %c0_i32_0 : i32, i32
  }
  func.func @transform_6(%arg0: i32) -> (i32, i32) {
    %c0_i32 = arith.constant 0 : i32
    %c0_i32_0 = arith.constant 0 : i32
    %c0_i32_1 = arith.constant 0 : i32
    return %c0_i32, %c0_i32_0 : i32, i32
  }
  func.func @transform_7(%arg0: i32) -> (i32, i32) {
    %c0_i32 = arith.constant 0 : i32
    %c0_i32_0 = arith.constant 0 : i32
    %c0_i32_1 = arith.constant 0 : i32
    return %c0_i32, %c0_i32_0 : i32, i32
  }
  func.func @transform_8(%arg0: i32) -> (i32, i32) {
    %c0_i32 = arith.constant 0 : i32
    %c0_i32_0 = arith.constant 0 : i32
    %c0_i32_1 = arith.constant 0 : i32
    return %c0_i32, %c0_i32_0 : i32, i32
  }
  func.func @transform_9(%arg0: i32) -> (i32, i32) {
    %c0_i32 = arith.constant 0 : i32
    %c0_i32_0 = arith.constant 0 : i32
    %c0_i32_1 = arith.constant 0 : i32
    return %c0_i32, %c0_i32_0 : i32, i32
  }
  func.func @transform_10(%arg0: i32) -> (i32, i32) {
    %c0_i32 = arith.constant 0 : i32
    %c0_i32_0 = arith.constant 0 : i32
    %c0_i32_1 = arith.constant 0 : i32
    return %c0_i32, %c0_i32_0 : i32, i32
  }
  func.func @transform_11(%arg0: i32) -> (i32, i32) {
    %c0_i32 = arith.constant 0 : i32
    %c0_i32_0 = arith.constant 0 : i32
    %c0_i32_1 = arith.constant 0 : i32
    return %c0_i32, %c0_i32_0 : i32, i32
  }
  func.func @transform_12(%arg0: i32) -> (i32, i32) {
    %c0_i32 = arith.constant 0 : i32
    %c0_i32_0 = arith.constant 0 : i32
    %c0_i32_1 = arith.constant 0 : i32
    return %c0_i32, %c0_i32_0 : i32, i32
  }
  func.func @transform_13(%arg0: i32) -> (i32, i32, i32) {
    %c0_i32 = arith.constant 0 : i32
    %c0_i32_0 = arith.constant 0 : i32
    %c0_i32_1 = arith.constant 0 : i32
    return %arg0, %c0_i32, %c0_i32_0 : i32, i32, i32
  }
}

</mosaic_0001>

<bundles_post_ra>
// kernel: tpu_custom_call.1
= control target key start
LH: loop header
LB: loop body
LE: loop exit
PB: predicated region body
PF: predicated region fallthrough
CT: control target
= control target key end

     0   :  { %18 = vsyncpa [#allocation5], 0  ;;  %s1429_s0 = inlined_call_operand.vmem [shape: f32[2,8,35], index: 0, kind: input, shape index: {}]   ;;  %s1430_s1 = inlined_call_operand.vmem [shape: f32[2,6,32], index: 1, kind: input, shape index: {}]   ;;  %s1431_s2 = inlined_call_operand.vmem [shape: f32[2,1,16], index: 2, kind: input, shape index: {}]   ;;  %s1432_s3 = inlined_call_operand.vmem [shape: f32[8,32], index: 3, kind: input, shape index: {}]   ;;  %s1433_s4 = inlined_call_operand.vmem [shape: f32[8,1], index: 4, kind: input, shape index: {}]   ;;  %s1434_s5 = inlined_call_operand.vmem [shape: f32[8,6], index: 5, kind: input, shape index: {}]   ;;  %s1435_s6 = inlined_call_operand.vmem [shape: f32[8,1], index: 6, kind: input, shape index: {}]   ;;  %s1436_s7 = inlined_call_operand.vmem [shape: f32[8,48], index: 7, kind: input, shape index: {}]   ;;  %s1437_s8 = inlined_call_operand.vmem [shape: f32[8,1], index: 8, kind: input, shape index: {}]   ;;  %s1438_s9 = inlined_call_operand.vmem [shape: f32[8,24], index: 9, kind: input, shape index: {}]   ;;  %s1439_s10 = inlined_call_operand.vmem [shape: f32[8,1], index: 10, kind: input, shape index: {}]   ;;  %s1440_s11 = inlined_call_operand.vmem [shape: f32[8,16], index: 11, kind: input, shape index: {}]   ;;  %s1441_s12 = inlined_call_operand.vmem [shape: f32[8,1], index: 12, kind: input, shape index: {}]   ;;  %s1442_s13 = inlined_call_operand.hbm [shape: f32[2,8,32], index: 13, kind: output, shape index: {}]  }
   0x1   :  { %20 = vsyncpa [#allocation5 + $0x1], 0  ;;  %s1258_s25 = smov 0   ;;  %s1260_s26 = smov 0  }
   0x2   :  { %s1262_s27 = smov 0   ;;  %s1264_s28 = smov 0  }
   0x3 LB: > { %1447 = sst [smem:[#allocation7_spill]] %s1174_s27  ;;  %s1279_s29 = sadd.s32 4294967295, %s1178_s28   ;;  %s1178_s28 = sphi %s1264_s28, %s1454_s28   ;;  %s1174_s27 = sphi %s1262_s27, %s1456_s27   ;;  %s1170_s26 = sphi %s1260_s26, %s1458_s26   ;;  %s1166_s25 = sphi %s1258_s25, %s1457_s25  }
   0x4   : > { %s985_s30 = sadd.s32 4294967294, %s1178_s28   ;;  %s1283_s14 = sadd.s32 1, %s1178_s28  }
   0x5   : > { %1448 = sst [smem:[#allocation8_spill]] %s1283_s14  ;;  %s321_s15 = sadd.s32 1, %s1174_s27 }
   0x6   : > { %s318_s16 = ssub.s32 %s1178_s28, %s1283_s14  ;;  %p331_p0 = scmp.ne.s32.totalorder %s1174_s27, %s1170_s26 }
   0x7   : > { %p319_p1 = scmp.eq.s32.totalorder %s318_s16, 0  ;;  %p332_p2 = scmp.eq.s32.totalorder %s1279_s29, 1 }
   0x8   : > { %p337_p3 = scmp.ne.s32.totalorder %s1170_s26, %s1166_s25  ;;  %p338_p4 = scmp.eq.s32.totalorder %s985_s30, 1 }
   0x9   : > { %s1294_s17 = scalar_select %p319_p1, %s1174_s27, %s321_s15  }
   0xa   : > { %p1296_p5 = por %p332_p2, %p331_p0  ;;  %p1300_p6 = por %p338_p4, %p337_p3 }
   0xb   : > { %1449 = sst [smem:[#allocation9_spill]] %s1294_s17  ;;  %p988_p7 = scmp.ge.s32.totalorder %s1178_s28, 1 }
   0xc   : > { %s1451_s19 = scalar_select %p1300_p6, 1, 0 }
   0xd   : > { %p406_p8 = scmp.lt.s32.totalorder %s1178_s28, 3 }
   0xe   : > { %1452 = sst [smem:[#allocation10_spill]] %s1451_s19 }
   0xf   : > { %p407_p9 = pnand %p988_p7, %p406_p8 }
  0x10   : > { %p456_p10 = scmp.lt.s32.totalorder (!%p407_p9), %s1279_s29, 1  ;;  %s1183_s14 = smov (!%p407_p9), 125  }
  0x11   : > { %410 = sbr.rel (%p407_p9) target bundleno = 1310 (0x51e), region = 72  ;;  %s1184_s19 = smov (!%p407_p9), 127  }
  0x12   : > { %s1185_s27 = smov (!%p407_p9), 126   ;;  %s1186_s30 = smov (!%p407_p9), 1  }
  0x13   : > { %s453_s23 = sand.u32 (!%p407_p9), 1, %s1170_s26  }
  0x14   : > { %s989_s17 = sshll.u32 (!%p407_p9), %s453_s23, 3 }
  0x16   : > { %v1180_v0 = vmov 0.0   ;;  %vm1181_vm0 = vmmov 0   ;;  %s1311_s20 = scalar_select %p456_p10, %s1279_s29, 1  ;;  %v1182_v1 = vmov 0   ;;  %vm571_vm1 = vcmask 1045504   ;;  %v559_v2 = vld [vmem:[%s1434_s5] sm:$0xff] }
  0x17   : > { %1033 = vmatprep.subr.mxu1 %v1180_v0  ;;  %1035 = vmatprep.mubr.msk.f32.mxu1 %vm1181_vm0, %v1180_v0  ;;  %vm567_vm2 = vcmask 48128   ;;  %v561_v5 = vld [vmem:[%s1435_s6] sm:$0xff]  ;;  %vm645_vm3 = vcmask 7168   ;;  %vm648_vm4 = vcmask 277768   ;;  %vm485_vm5 = vcmask 261120  }
  0x18   : > { %1108 = vset.pattern.permute.xlu1 %v1182_v1  ;;  %1022 = vmatprep.subr.mxu0 %v1180_v0  ;;  %s990_s21 = sshll.u32 %s1311_s20, 3  ;;  %v479_v6 = vld [vmem:[%s1433_s4] sm:$0xff]  ;;  %647 = vst.msk [vmem:[#allocation2 + $0x8] sm:$0xff] %vm645_vm3, %v1180_v0  ;;  %646 = vst.msk [vmem:[#allocation2] sm:$0xff] %vm645_vm3, %v1180_v0  ;;  %vm655_vm6 = vcmask 269320   ;;  %vm685_vm7 = vcmask 392192   ;;  %s466_s15 = scalar_lea.vmem %s1431_s2, %s1311_s20 }
  0x19   : > { %1030 = vmatprep.mubr.msk.f32.mxu0 %vm1181_vm0, %v1180_v0  ;;  %1109 = vset.pattern.permute.xlu0 %v1182_v1  ;;  %s463_s24 = scalar_lea.vmem %s1430_s1, %s990_s21  ;;  %s459_s16 = scalar_lea.vmem %s1429_s0, %s990_s21  ;;  %766 = vst.msk [vmem:[#allocation3] sm:$0xff] %vm645_vm3, %v1180_v0  ;;  %v478_v10 = vld [vmem:[%s1432_s3] sm:$0xff]  ;;  %vm878_vm8 = vcmask 130048   ;;  %vm788_vm9 = vcmask 195584  }
  0x1a   : > { %v560_v3 = vld [vmem:[%s463_s24] sm:$0x3f]  ;;  %650 = vst.msk [vmem:[#allocation2 + $0x8] sm:$0xff] %vm648_vm4, %v1180_v0  ;;  %649 = vst.msk [vmem:[#allocation2] sm:$0xff] %vm648_vm4, %v1180_v0  ;;  %s1001_s21 = sshll.u32 %s1279_s29, 7  ;;  %s1187_s20 = smov [#allocation4]  }
  0x1b   : > { %v467_v4 = vld [vmem:[%s459_s16] sm:$0xff]  ;;  %1034 = vmatpush3.msk.msra.mxu1 %vm571_vm1, %v560_v3  ;;  %767 = vst.msk [vmem:[#allocation3] sm:$0xff] %vm648_vm4, %v1180_v0  ;;  %s903_s22 = scalar_lea.hbm %s1442_s13, %s1001_s21  ;;  %s1122_s29 = sshll.u32 %s1187_s20, 4  ;;  %s1123_s29 = int_to_ptr.vmem [resolvable:$false] %s1122_s29 }
  0x1c   : > { %475 = vrot.lane.b32.xlu0 %v467_v4, %s1183_s14  ;;  %1036 = vmatmul.mubr.msk.f32.vlgmr.msra.gmra.mxu1 %vm567_vm2, %v559_v2  ;;  %v679_v21 = vld [vmem:[%s1437_s8] sm:$0xff]  ;;  %s455_s14 = scalar_lea.vmem [#allocation4], %s989_s17 }
  0x1d   : > { %469 = vrot.lane.b32.xlu1 %v467_v4, %s1184_s19  ;;  %1038 = vmatprep.subr.mxu1 %v1180_v0  ;;  %v678_v28 = vld [vmem:[%s1436_s7] sm:$0xff]  ;;  %s905_s24 = sshll.u32 %s455_s14, 4  ;;  %s906_s24 = int_to_ptr.vmem [resolvable:$true] %s905_s24 }
  0x1e   : > { %1050 = vmatprep.mubr.msk.f32.mxu1 %vm1181_vm0, %v1180_v0  ;;  %v782_v40 = vld [vmem:[%s1439_s10] sm:$0xff]  ;;  %p1125_p0 = scmp.lt.s32.totalorder %s906_s24, %s1123_s29 }
  0x1f   : > { %v869_v41 = vld [vmem:[%s1440_s11] sm:$0xff] }
  0x20   : > { %472 = vrot.lane.b32.xlu0 %v467_v4, %s1185_s27  ;;  %v999_v42 = vld [vmem:[%s466_s15] ss:$0 sm:$0xff] }
  0x21   : > { %564 = vperm.xlu1 %1108, %v561_v5   ;;  %v877_v43 = vmul.f32 %v999_v42, %v869_v41  ;;  %v781_v47 = vld [vmem:[%s1438_s9] sm:$0xff] }
  0x22   : > { %v882_v48 = vld [vmem:[%s1441_s12] sm:$0xff] }
  0x23   : > { %v879_v44 = vsel %vm878_vm8, %v877_v43, 0.0 }
  0x24   : > { %482 = vperm.xlu0 %1109, %v479_v6  }
  0x8e   : > { %v476_v7 = vpop.permute.xlu0 %475 }
  0x8f   : > { %1023 = vmatpush3.msra.mxu0 %v476_v7  ;;  %v470_v9 = vpop.permute.xlu1 %469 }
  0x90   : > { %1024 = vmatprep.subr.mxu0 %v1180_v0 }
  0x92   : > { %v473_v8 = vpop.permute.xlu0 %472 }
  0x93   : > { %1025 = vmatpush3.msra.mxu0 %v473_v8 }
  0x94   : > { %1026 = vmatprep.subr.mxu0 %v1180_v0 }
  0x95   : > { %1027 = vmatpush3.msra.mxu0 %v470_v9 }
  0x96   : > { %1028 = vmatprep.subr.mxu0 %v1180_v0 }
  0x97   : > { %1029 = vmatpush3.msra.mxu0 %v467_v4 }
  0x98   : > { %1031 = vmatmul.mubr.msk.f32.vlgmr.msra.gmra.mxu0 %vm485_vm5, %v478_v10  ;;  %1053 = vmatprep.subr.mxu0 %v1180_v0 }
  0x99   : > { %1059 = vmatprep.mubr.msk.f32.mxu0 %vm1181_vm0, %v1180_v0 }
  0x9c   : > { %v565_v11 = vpop.permute.xlu1 %564 }
  0x9f   : > { %v483_v16 = vpop.permute.xlu0 %482 }
  0xdc   : > { %v641_v12 = vpop.f32.mrf.mxu1 }
  0xdd   : > { %v642_v13 = vadd.f32 %v641_v12, %v565_v11 }
  0xde   : > { %v1037_v14 = vpop.f32.mrf.mxu1 }
  0xdf   : > { %658 = vrot.lane.b32.xlu1 %v642_v13, %s1186_s30 }
 0x151   : > { %v659_v15 = vpop.permute.xlu1 %658 }
 0x152   : > { %661 = vst.msk [vmem:[#allocation2 + $0x8] sm:$0xff] %vm655_vm6, %v659_v15 }
 0x158   : > { %v555_v17 = vpop.f32.mrf.mxu0 }
 0x159   : > { %v556_v18 = vadd.f32 %v555_v17, %v483_v16  ;;  %v663_v20 = vld [vmem:[#allocation2 + $0x8] sm:$0xff] }
 0x15a   : > { %v1032_v19 = vpop.f32.mrf.mxu0  ;;  %674 = vrot.lane.b32.xlu0 %v663_v20, %s1185_s27 }
 0x15b   : > { %652 = vrot.lane.b32.xlu1 %v556_v18, %s1186_s30 }
 0x15e   : > { %668 = vrot.lane.b32.xlu0 %v663_v20, %s1184_s19 }
 0x162   : > { %682 = vperm.xlu0 %1109, %v679_v21  }
 0x1cc   : > { %v675_v23 = vpop.permute.xlu0 %674 }
 0x1cd   : > { %v653_v22 = vpop.permute.xlu1 %652  ;;  %1039 = vmatpush3.msra.mxu1 %v675_v23 }
 0x1ce   : > { %656 = vst.msk [vmem:[#allocation2] sm:$0xff] %vm655_vm6, %v653_v22  ;;  %1040 = vmatprep.subr.mxu1 %v1180_v0 }
 0x1d0   : > { %v669_v26 = vpop.permute.xlu0 %668 }
 0x1d5   : > { %v662_v24 = vld [vmem:[#allocation2] sm:$0xff] }
 0x1d6   : > { %672 = vrot.lane.b32.xlu1 %v662_v24, %s1185_s27 }
 0x1da   : > { %666 = vrot.lane.b32.xlu1 %v662_v24, %s1184_s19 }
 0x1dd   : > { %v683_v29 = vpop.permute.xlu0 %682 }
 0x248   : > { %v673_v25 = vpop.permute.xlu1 %672 }
 0x249   : > { %1041 = vmatpush3.msra.mxu1 %v673_v25 }
 0x24a   : > { %1042 = vmatprep.subr.mxu1 %v1180_v0 }
 0x24b   : > { %1043 = vmatpush3.msra.mxu1 %v669_v26 }
 0x24c   : > { %v667_v27 = vpop.permute.xlu1 %666  ;;  %1044 = vmatprep.subr.mxu1 %v1180_v0 }
 0x24d   : > { %1045 = vmatpush3.msra.mxu1 %v667_v27 }
 0x24e   : > { %1046 = vmatprep.subr.mxu1 %v1180_v0 }
 0x24f   : > { %1047 = vmatpush3.msra.mxu1 %v663_v20 }
 0x250   : > { %1048 = vmatprep.subr.mxu1 %v1180_v0 }
 0x251   : > { %1049 = vmatpush3.msra.mxu1 %v662_v24 }
 0x252   : > { %1051 = vmatmul.mubr.msk.f32.vlgmr.msra.gmra.mxu1 %vm685_vm7, %v678_v28 }
 0x312   : > { %v755_v30 = vpop.f32.mrf.mxu1 }
 0x313   : > { %v756_v31 = vadd.f32 %v755_v30, %v683_v29 }
 0x314   : > { %v1052_v32 = vpop.f32.mrf.mxu1 }
 0x315   : > { %v996_v33 = vmul.f32 -1.442695, %v756_v31 }
 0x317   : > { %1110 = vpow2.f32 %v996_v33 }
 0x324   : > { %v1111_v34 = vpop.eup %1110 }
 0x325   : > { %v762_v35 = vadd.f32 1.0, %v1111_v34 }
 0x327   : > { %1112 = vrcp.f32 %v762_v35 }
 0x334   : > { %v1113_v36 = vpop.eup %1112 }
 0x335   : > { %v765_v37 = vmul.f32 %v1113_v36, %v756_v31 }
 0x337   : > { %769 = vrot.lane.b32.xlu1 %v765_v37, %s1186_s30  ;;  %s1124_s30 = scalar_lea.vmem %s1123_s29, 256 }
 0x3a9   : > { %v770_v38 = vpop.permute.xlu1 %769 }
 0x3aa   : > { %772 = vst.msk [vmem:[#allocation3] sm:$0xff] %vm655_vm6, %v770_v38 }
 0x3b1   : > { %v773_v39 = vld [vmem:[#allocation3] sm:$0xff] }
 0x3b2   : > { %775 = vrot.lane.b32.xlu1 %v773_v39, %s1184_s19  ;;  %778 = vrot.lane.b32.xlu0 %v773_v39, %s1185_s27  ;;  %s892_s19 = scalar_lea.sflag [#allocation5], %s453_s23  ;;  %s1118_s27 = scalar_lea.vmem %s906_s24, 128 }
 0x3b3   : > { %p1119_p11 = scmp.ne.s32.totalorder %s906_s24, %s1118_s27  ;;  %p1126_p1 = scmp.lt.s32.totalorder %s1124_s30, %s1118_s27 }
 0x3b5   : > { %p1120_p12 = pnand %p1119_p11, %p1296_p5  ;;  %p1127_p2 = por %p1126_p1, %p1125_p0 }
 0x3b6   : > { %785 = vperm.xlu1 %1108, %v782_v40  }
 0x3b7   : > { %p1121_p13 = pneg %p1120_p12 }
 0x3b9   : > { %p1128_p3 = pnand %p1127_p2, %p1121_p13 }
 0x3d1   : > { %880 = vadd.xlane.f32.xlu0 %v879_v44 }
 0x424   : > { %v779_v45 = vpop.permute.xlu0 %778  ;;  %v776_v46 = vpop.permute.xlu1 %775 }
 0x425   : > { %1054 = vmatpush3.msra.mxu0 %v779_v45 }
 0x426   : > { %1055 = vmatprep.subr.mxu0 %v1180_v0 }
 0x427   : > { %1056 = vmatpush3.msra.mxu0 %v776_v46 }
 0x428   : > { %1057 = vmatprep.subr.mxu0 %v1180_v0 }
 0x429   : > { %1058 = vmatpush3.msra.mxu0 %v773_v39 }
 0x42a   : > { %1060 = vmatmul.mubr.msk.f32.vlgmr.msra.gmra.mxu0 %vm788_vm9, %v781_v47 }
 0x431   : > { %v786_v51 = vpop.permute.xlu1 %785 }
 0x45a   : > { %v881_v49 = vpop.xlane.xlu0 %880 }
 0x45b   : > { %v883_v50 = vadd.f32 %v882_v48, %v881_v49 }
 0x45d   : > { %886 = vperm.xlu1 %1108, %v883_v50  }
 0x4d8   : > { %v887_v60 = vpop.permute.xlu1 %886 }
 0x4ea   : > { %v858_v52 = vpop.f32.mrf.mxu0 }
 0x4eb   : > { %v859_v53 = vadd.f32 %v858_v52, %v786_v51 }
 0x4ec   : > { %v1061_v54 = vpop.f32.mrf.mxu0 }
 0x4ed   : > { %v998_v55 = vmul.f32 -1.442695, %v859_v53 }
 0x4ef   : > { %1114 = vpow2.f32 %v998_v55 }
 0x4fc   : > { %v1115_v56 = vpop.eup %1114 }
 0x4fd   : > { %v865_v57 = vadd.f32 1.0, %v1115_v56 }
 0x4ff   : > { %1116 = vrcp.f32 %v865_v57 }
 0x50c   : > { %v1117_v58 = vpop.eup %1116 }
 0x50d   : > { %v868_v59 = vmul.f32 %v1117_v58, %v859_v53 }
 0x50f   : > { %v889_v61 = vadd.f32 %v887_v60, %v868_v59 }
 0x511   : > { %890 = vst.msk [vmem:[%s455_s14] sm:$0xff] %vm485_vm5, %v889_v61 }
 0x512   : > { %1131 = shalt.err (!%p1128_p3)
}
 0x513   : > { %s1132_s17 = scalar_lea.hbm %s903_s22, 128  ;;  %s1136_s14 = scalar_lea.hbm %s1442_s13, 256 }
 0x514   : > { %p1133_p4 = scmp.ne.s32.totalorder %s903_s22, %s1132_s17  ;;  %p1137_p9 = scmp.lt.s32.totalorder %s903_s22, %s1442_s13 }
 0x515   : > { %p1138_p10 = scmp.lt.s32.totalorder %s1136_s14, %s1132_s17 }
 0x516   : > { %p1134_p7 = pnand %p1133_p4, %p1296_p5 }
 0x517   : > { %p1139_p11 = por %p1138_p10, %p1137_p9 }
 0x518   : > { %p1135_p8 = pneg %p1134_p7 }
 0x51a   : > { %p1140_p12 = pnand %p1139_p11, %p1135_p8 }
 0x51c   : > { %1143 = shalt.err (!%p1140_p12)
}
 0x51d   : > { %1062 = dma.vmem_to_hbm [thread:$0]  (%p1296_p5), %s906_s24, 128, %s903_s22, %s892_s19  }
 0x51e PF: > { %p1068_p13 = scmp.ge.s32.totalorder %s1178_s28, 2  ;;  %s917_s20 = sand.u32 1, %s1166_s25  }
 0x51f   : > { %s918_s29 = scalar_lea.sflag [#allocation5], %s917_s20 }
 0x520   : > { %p1065_p0 = pnand %p1068_p13, %p1300_p6 }
 0x522   : > { %p1066_p1 = pneg %p1065_p0 }
 0x524   : > { %1161 = dma.done.wait (%p1066_p1), %s918_s29, 128  }
 0x525   : > { %1163 = vsyncadd (%p1066_p1), %s918_s29, 4294967168  ;;  %s1454_s28 = sld [smem:[#allocation8_spill]]  ;;  %s1457_s25 = smov %s1170_s26 }
 0x526   : > { %s1455_s30 = sld [smem:[#allocation7_spill]] }
 0x527   : > { %s1456_s27 = sld [smem:[#allocation9_spill]] }
 0x52b   : > { %p23_p2 = scmp.ge.s32.totalorder %s1454_s28, 4  }
 0x52c   : > { %s1458_s26 = smov %s1455_s30 }
 0x52d   :  { %25 = sbr.rel (!%p23_p2) target bundleno = 3 (0x3), region = 113 }
 0x532   :  { %923 = vsyncpa [#allocation5], 1 }
 0x533   :  { %925 = vsyncpa [#allocation5 + $0x1], 1 }

</bundles_post_ra>
